<compile_context>
chip_gen: v6e
topology: v6e:2x2x1
jax: 0.10.0
libtpu: 0.0.40
codegen_flags: <defaults>
</compile_context>

<pallas_src>
import math
import functools

import jax
import jax.numpy as jnp
from jax.experimental import pallas as pl
from jax.experimental.pallas import tpu as pltpu


def _round_up(n, m):
    return (n + m - 1) // m * m


def _choose_block_b(B, cap=1024):
    """Pick (block_b, B_pad). Prefer no-copy choices (block == B, or a
    multiple-of-8 divisor of round_up(B, 8))."""
    if B <= cap:
        return B, B                               # one full-array block, no pad
    B8 = _round_up(B, 8)
    for d in range(cap, 7, -8):                   # largest mult-of-8 divisor <= cap
        if B8 % d == 0 and d >= max(8, cap // 4):
            return d, B8                          # no pad when B is a multiple of 8
    return cap, _round_up(B, cap)                 # fall back: pad the tail block


# ----------------------------- kernels ------------------------------------ #

def decoder_attn_kernel(x_ref, watt_ref, ab_ref, e_ref,
                        w1_ref, b1_ref, w2_ref, b2_ref, w3_ref, b3_ref,
                        o_ref):
    # x_ref: (bb, T*D) full-lane; watt: (T*D, T) block-diag atten_w; ab: (1, T)
    # e: (T, T*D) ones-expander; w1: (T*D, H) = W1 tiled T times (ws-reduction
    # fused into layer 1); w2: (H, H); w3: (H, 2).
    x = x_ref[...]                                                  # read once
    s = jnp.dot(x, watt_ref[...], preferred_element_type=jnp.float32) + ab_ref[...]
    a = jnp.tanh(s)                                                 # (bb, T)
    a_exp = jnp.dot(a, e_ref[...], preferred_element_type=jnp.float32)   # (bb, T*D)
    prod = a_exp * x                                                # full-lane VPU
    h = jnp.maximum(
        jnp.dot(prod, w1_ref[...], preferred_element_type=jnp.float32) + b1_ref[...], 0.0)
    h = jnp.maximum(
        jnp.dot(h, w2_ref[...], preferred_element_type=jnp.float32) + b2_ref[...], 0.0)
    o_ref[...] = (jnp.dot(h, w3_ref[...], preferred_element_type=jnp.float32)
                  + b3_ref[...]).astype(o_ref.dtype)


def decoder_last_kernel(x_ref,
                        w1_ref, b1_ref, w2_ref, b2_ref, w3_ref, b3_ref,
                        o_ref):
    # self_attention=False path: x_ref is already the (bb, D) last-timestep slice.
    h = jnp.maximum(
        jnp.dot(x_ref[...], w1_ref[...], preferred_element_type=jnp.float32) + b1_ref[...], 0.0)
    h = jnp.maximum(
        jnp.dot(h, w2_ref[...], preferred_element_type=jnp.float32) + b2_ref[...], 0.0)
    o_ref[...] = (jnp.dot(h, w3_ref[...], preferred_element_type=jnp.float32)
                  + b3_ref[...]).astype(o_ref.dtype)


# ----------------------------- wrapper ------------------------------------ #

@functools.partial(jax.jit, static_argnames=("self_attention", "block_b"))
def decoder_forward(x, params, self_attention=True, block_b=None):
    """x: (B, T, D) float32. Returns (B, 2) float32."""
    B, T, D = x.shape
    TD = T * D
    w1, b1 = params["w1"], params["b1"]
    w2, b2 = params["w2"], params["b2"]
    w3, b3 = params["w3"], params["b3"]
    H = w1.shape[1]
    n_out = w3.shape[1]

    if block_b is None:
        bb, B_pad = _choose_block_b(B)
    elif block_b >= B:
        bb, B_pad = B, B
    else:
        bb = _round_up(block_b, 8)
        B_pad = _round_up(B, bb)
    grid = (B_pad // bb,)

    row = lambda i: (i, 0)
    const = lambda i: (0, 0)

    out_shape = jax.ShapeDtypeStruct((B_pad, n_out), jnp.float32)
    out_spec = pl.BlockSpec((bb, n_out), row)        # block width == full array width
    mlp_tail_specs = [
        pl.BlockSpec((1, H), const),                 # b1
        pl.BlockSpec((H, H), const),                 # w2
        pl.BlockSpec((1, H), const),                 # b2
        pl.BlockSpec((H, n_out), const),             # w3
        pl.BlockSpec((1, n_out), const),             # b3
    ]
    compiler_params = pltpu.CompilerParams(
        dimension_semantics=("parallel",),           # shard batch blocks across TCs
        vmem_limit_bytes=32 * 1024 * 1024,
    )

    if self_attention:
        aw, ab = params["atten_w"], params["atten_bias"]          # (T, D), (1, T)
        eye_t = jnp.eye(T, dtype=jnp.float32)
        # Block-diagonal score weights: watt[t*D + d, t] = atten_w[t, d]
        watt = (aw[:, :, None] * eye_t[:, None, :]).reshape(TD, T)
        # Expander: e[t, t*D + d] = 1  (broadcast a over each timestep's D lanes)
        expander = jnp.repeat(eye_t, D, axis=1)                   # (T, T*D)
        # ws-reduction fused into layer 1: w1 tiled T times along its input dim.
        w1_tiled = jnp.tile(w1, (T, 1))                           # (T*D, H)

        x_flat = x.reshape(B, TD)                                 # contiguous, free
        if B_pad != B:
            x_flat = jnp.pad(x_flat, ((0, B_pad - B), (0, 0)))

        in_specs = [
            pl.BlockSpec((bb, TD), row),                          # x
            pl.BlockSpec((TD, T), const),                         # watt
            pl.BlockSpec((1, T), const),                          # atten_bias
            pl.BlockSpec((T, TD), const),                         # expander
            pl.BlockSpec((TD, H), const),                         # w1_tiled
        ] + mlp_tail_specs
        out = pl.pallas_call(
            decoder_attn_kernel,
            out_shape=out_shape,
            grid_spec=pltpu.PrefetchScalarGridSpec(
                num_scalar_prefetch=0, grid=grid,
                in_specs=in_specs, out_specs=out_spec),
            compiler_params=compiler_params,
        )(x_flat, watt, ab, expander, w1_tiled, b1, w2, b2, w3, b3)
    else:
        x_last = x[:, -1, :]                                      # (B, D) in wrapper
        if B_pad != B:
            x_last = jnp.pad(x_last, ((0, B_pad - B), (0, 0)))
        in_specs = [
            pl.BlockSpec((bb, D), row),                           # x last step
            pl.BlockSpec((D, H), const),                          # w1
        ] + mlp_tail_specs
        out = pl.pallas_call(
            decoder_last_kernel,
            out_shape=out_shape,
            grid_spec=pltpu.PrefetchScalarGridSpec(
                num_scalar_prefetch=0, grid=grid,
                in_specs=in_specs, out_specs=out_spec),
            compiler_params=compiler_params,
        )(x_last, w1, b1, w2, b2, w3, b3)

    return out[:B] if B_pad != B else out


# ----------------------- parameter initialization -------------------------- #

def init_params(key, encoded_dim, T, linear_size):
    """Deterministic synthetic init mirroring the module's __init__ shapes."""
    k = jax.random.split(key, 8)
    # SelfAttention: atten_w (T, D, 1) glorot over (D, 1), stored squeezed as
    # (T, D); atten_bias filled with 0, stored as (1, T).
    stdv = math.sqrt(6.0 / (encoded_dim + 1))
    atten_w = jax.random.uniform(k[0], (T, encoded_dim), jnp.float32, -stdv, stdv)
    atten_bias = jnp.zeros((1, T), jnp.float32)

    def linear(kw, kb, fan_in, fan_out):
        bound = 1.0 / math.sqrt(fan_in)
        w = jax.random.uniform(kw, (fan_in, fan_out), jnp.float32, -bound, bound)
        b = jax.random.uniform(kb, (1, fan_out), jnp.float32, -bound, bound)
        return w, b

    # decoder_layer_num = 3 -> Linear(D,H)+ReLU, Linear(H,H)+ReLU, Linear(H,2)
    w1, b1 = linear(k[1], k[2], encoded_dim, linear_size)
    w2, b2 = linear(k[3], k[4], linear_size, linear_size)
    w3, b3 = linear(k[5], k[6], linear_size, 2)
    return dict(atten_w=atten_w, atten_bias=atten_bias,
                w1=w1, b1=b1, w2=w2, b2=b2, w3=w3, b3=b3)


# -------------------------- pure-JAX reference ----------------------------- #

def decoder_ref(x, p, self_attention=True):
    hp = jax.lax.Precision.HIGHEST
    if self_attention:
        scores = jnp.einsum("btd,td->bt", x, p["atten_w"], precision=hp) + p["atten_bias"]
        a = jnp.tanh(scores)
        h = jnp.einsum("bt,btd->bd", a, x, precision=hp)
    else:
        h = x[:, -1, :]
    h = jax.nn.relu(jnp.dot(h, p["w1"], precision=hp) + p["b1"])
    h = jax.nn.relu(jnp.dot(h, p["w2"], precision=hp) + p["b2"])
    return jnp.dot(h, p["w3"], precision=hp) + p["b3"]


# --------------------------------- main ------------------------------------ #

if __name__ == "__main__":
    T, D, H = 8, 32, 32          # window (seq_len), encoded_dim, linear_size

    key = jax.random.PRNGKey(0)
    kx, kp, kx2, kx3 = jax.random.split(key, 4)
    params = init_params(kp, encoded_dim=D, T=T, linear_size=H)

    # 1) self_attention=True, tiny batch (single full-array block, no padding)
    x = jax.random.normal(kx, (4, T, D), jnp.float32)
    out_attn = decoder_forward(x, params, self_attention=True)
    jax.block_until_ready(out_attn)
    ref_attn = decoder_ref(x, params, self_attention=True)
    assert out_attn.shape == (4, 2)
    assert jnp.allclose(out_attn, ref_attn, atol=1e-4, rtol=1e-4)

    # 2) self_attention=True, explicit small block -> multi-step grid + padded
    #    tail (B=20, block_b=8 -> 3 grid steps)
    x2 = jax.random.normal(kx2, (20, T, D), jnp.float32)
    out_grid = decoder_forward(x2, params, self_attention=True, block_b=8)
    jax.block_until_ready(out_grid)
    ref_grid = decoder_ref(x2, params, self_attention=True)
    assert out_grid.shape == (20, 2)
    assert jnp.allclose(out_grid, ref_grid, atol=1e-4, rtol=1e-4)

    # 3) self_attention=True, large batch -> default block_b=1024, 2 grid steps,
    #    no padding copy (divisor path)
    x3 = jax.random.normal(kx3, (2048, T, D), jnp.float32)
    out_big = decoder_forward(x3, params, self_attention=True)
    jax.block_until_ready(out_big)
    ref_big = decoder_ref(x3, params, self_attention=True)
    assert out_big.shape == (2048, 2)
    assert jnp.allclose(out_big, ref_big, atol=1e-4, rtol=1e-4)

    # 4) self_attention=False path (last-timestep slice done in the wrapper)
    out_last = decoder_forward(x, params, self_attention=False)
    jax.block_until_ready(out_last)
    ref_last = decoder_ref(x, params, self_attention=False)
    assert out_last.shape == (4, 2)
    assert jnp.allclose(out_last, ref_last, atol=1e-4, rtol=1e-4)

    print("KERNEL_OK")
</pallas_src>

<mosaic_0001>
module attributes {stable_mosaic.version = 11 : i64} {
  func.func @decoder_attn_kernel(%arg0: i32, %arg1: memref<4x256xf32, #tpu.memory_space<vmem>>, %arg2: memref<256x8xf32, #tpu.memory_space<vmem>>, %arg3: memref<1x8xf32, #tpu.memory_space<vmem>>, %arg4: memref<8x256xf32, #tpu.memory_space<vmem>>, %arg5: memref<256x32xf32, #tpu.memory_space<vmem>>, %arg6: memref<1x32xf32, #tpu.memory_space<vmem>>, %arg7: memref<32x32xf32, #tpu.memory_space<vmem>>, %arg8: memref<1x32xf32, #tpu.memory_space<vmem>>, %arg9: memref<32x2xf32, #tpu.memory_space<vmem>>, %arg10: memref<1x2xf32, #tpu.memory_space<vmem>>, %arg11: memref<4x2xf32, #tpu.memory_space<vmem>>) attributes {dimension_semantics = [#tpu.dimension_semantics<parallel>], iteration_bounds = array<i64: 1>, scalar_prefetch = 0 : i64, scratch_operands = 0 : i64, tpu.core_type = #tpu.core_type<tc>, window_params = [{transform_indices = @transform_0, window_bounds = array<i64: 4, 256>}, {pipeline_mode = #tpu.pipeline_mode<synchronous>, transform_indices = @transform_1, window_bounds = array<i64: 256, 8>}, {pipeline_mode = #tpu.pipeline_mode<synchronous>, transform_indices = @transform_2, window_bounds = array<i64: 1, 8>}, {pipeline_mode = #tpu.pipeline_mode<synchronous>, transform_indices = @transform_3, window_bounds = array<i64: 8, 256>}, {pipeline_mode = #tpu.pipeline_mode<synchronous>, transform_indices = @transform_4, window_bounds = array<i64: 256, 32>}, {pipeline_mode = #tpu.pipeline_mode<synchronous>, transform_indices = @transform_5, window_bounds = array<i64: 1, 32>}, {pipeline_mode = #tpu.pipeline_mode<synchronous>, transform_indices = @transform_6, window_bounds = array<i64: 32, 32>}, {pipeline_mode = #tpu.pipeline_mode<synchronous>, transform_indices = @transform_7, window_bounds = array<i64: 1, 32>}, {pipeline_mode = #tpu.pipeline_mode<synchronous>, transform_indices = @transform_8, window_bounds = array<i64: 32, 2>}, {pipeline_mode = #tpu.pipeline_mode<synchronous>, transform_indices = @transform_9, window_bounds = array<i64: 1, 2>}, {transform_indices = @transform_10, window_bounds = array<i64: 4, 2>}]} {
    %c0 = arith.constant 0 : index
    %c0_0 = arith.constant 0 : index
    %0 = vector.load %arg1[%c0, %c0_0] : memref<4x256xf32, #tpu.memory_space<vmem>>, vector<4x256xf32>
    %c0_1 = arith.constant 0 : index
    %c0_2 = arith.constant 0 : index
    %1 = vector.load %arg2[%c0_1, %c0_2] : memref<256x8xf32, #tpu.memory_space<vmem>>, vector<256x8xf32>
    %cst = arith.constant dense<0.000000e+00> : vector<4x8xf32>
    %2 = tpu.matmul %0, %1, %cst {dimension_numbers = #tpu.dot_dimension_numbers<[1], [0], [0], [1], [0, 0, 1, 1], [], []>} : vector<4x256xf32>, vector<256x8xf32>, vector<4x8xf32> -> vector<4x8xf32>
    %c0_3 = arith.constant 0 : index
    %c0_4 = arith.constant 0 : index
    %3 = vector.load %arg3[%c0_3, %c0_4] : memref<1x8xf32, #tpu.memory_space<vmem>>, vector<1x8xf32>
    %4 = vector.broadcast %3 : vector<1x8xf32> to vector<4x8xf32>
    %5 = arith.addf %2, %4 : vector<4x8xf32>
    %6 = math.tanh %5 : vector<4x8xf32>
    %c0_5 = arith.constant 0 : index
    %c0_6 = arith.constant 0 : index
    %7 = vector.load %arg4[%c0_5, %c0_6] : memref<8x256xf32, #tpu.memory_space<vmem>>, vector<8x256xf32>
    %cst_7 = arith.constant dense<0.000000e+00> : vector<4x256xf32>
    %8 = tpu.matmul %6, %7, %cst_7 {dimension_numbers = #tpu.dot_dimension_numbers<[1], [0], [0], [1], [0, 0, 1, 1], [], []>} : vector<4x8xf32>, vector<8x256xf32>, vector<4x256xf32> -> vector<4x256xf32>
    %9 = arith.mulf %8, %0 : vector<4x256xf32>
    %c0_8 = arith.constant 0 : index
    %c0_9 = arith.constant 0 : index
    %10 = vector.load %arg5[%c0_8, %c0_9] : memref<256x32xf32, #tpu.memory_space<vmem>>, vector<256x32xf32>
    %cst_10 = arith.constant dense<0.000000e+00> : vector<4x32xf32>
    %11 = tpu.matmul %9, %10, %cst_10 {dimension_numbers = #tpu.dot_dimension_numbers<[1], [0], [0], [1], [0, 0, 1, 1], [], []>} : vector<4x256xf32>, vector<256x32xf32>, vector<4x32xf32> -> vector<4x32xf32>
    %c0_11 = arith.constant 0 : index
    %c0_12 = arith.constant 0 : index
    %12 = vector.load %arg6[%c0_11, %c0_12] : memref<1x32xf32, #tpu.memory_space<vmem>>, vector<1x32xf32>
    %13 = vector.broadcast %12 : vector<1x32xf32> to vector<4x32xf32>
    %14 = arith.addf %11, %13 : vector<4x32xf32>
    %cst_13 = arith.constant 0.000000e+00 : f32
    %15 = vector.broadcast %cst_13 : f32 to vector<4x32xf32>
    %16 = arith.maximumf %14, %15 : vector<4x32xf32>
    %c0_14 = arith.constant 0 : index
    %c0_15 = arith.constant 0 : index
    %17 = vector.load %arg7[%c0_14, %c0_15] : memref<32x32xf32, #tpu.memory_space<vmem>>, vector<32x32xf32>
    %cst_16 = arith.constant dense<0.000000e+00> : vector<4x32xf32>
    %18 = tpu.matmul %16, %17, %cst_16 {dimension_numbers = #tpu.dot_dimension_numbers<[1], [0], [0], [1], [0, 0, 1, 1], [], []>} : vector<4x32xf32>, vector<32x32xf32>, vector<4x32xf32> -> vector<4x32xf32>
    %c0_17 = arith.constant 0 : index
    %c0_18 = arith.constant 0 : index
    %19 = vector.load %arg8[%c0_17, %c0_18] : memref<1x32xf32, #tpu.memory_space<vmem>>, vector<1x32xf32>
    %20 = vector.broadcast %19 : vector<1x32xf32> to vector<4x32xf32>
    %21 = arith.addf %18, %20 : vector<4x32xf32>
    %cst_19 = arith.constant 0.000000e+00 : f32
    %22 = vector.broadcast %cst_19 : f32 to vector<4x32xf32>
    %23 = arith.maximumf %21, %22 : vector<4x32xf32>
    %c0_20 = arith.constant 0 : index
    %c0_21 = arith.constant 0 : index
    %24 = vector.load %arg9[%c0_20, %c0_21] : memref<32x2xf32, #tpu.memory_space<vmem>>, vector<32x2xf32>
    %cst_22 = arith.constant dense<0.000000e+00> : vector<4x2xf32>
    %25 = tpu.matmul %23, %24, %cst_22 {dimension_numbers = #tpu.dot_dimension_numbers<[1], [0], [0], [1], [0, 0, 1, 1], [], []>} : vector<4x32xf32>, vector<32x2xf32>, vector<4x2xf32> -> vector<4x2xf32>
    %c0_23 = arith.constant 0 : index
    %c0_24 = arith.constant 0 : index
    %26 = vector.load %arg10[%c0_23, %c0_24] : memref<1x2xf32, #tpu.memory_space<vmem>>, vector<1x2xf32>
    %27 = vector.broadcast %26 : vector<1x2xf32> to vector<4x2xf32>
    %28 = arith.addf %25, %27 : vector<4x2xf32>
    %c0_25 = arith.constant 0 : index
    %c0_26 = arith.constant 0 : index
    %29 = vector.load %arg11[%c0_25, %c0_26] : memref<4x2xf32, #tpu.memory_space<vmem>>, vector<4x2xf32>
    tpu.vector_store %arg11[%c0_25, %c0_26], %28 {strides = array<i32>} : memref<4x2xf32, #tpu.memory_space<vmem>>, vector<4x2xf32>,
    return
  }
  func.func @transform_0(%arg0: i32) -> (i32, i32) {
    %c0_i32 = arith.constant 0 : i32
    %c0_i32_0 = arith.constant 0 : i32
    return %arg0, %c0_i32 : i32, i32
  }
  func.func @transform_1(%arg0: i32) -> (i32, i32) {
    %c0_i32 = arith.constant 0 : i32
    %c0_i32_0 = arith.constant 0 : i32
    %c0_i32_1 = arith.constant 0 : i32
    return %c0_i32, %c0_i32_0 : i32, i32
  }
  func.func @transform_2(%arg0: i32) -> (i32, i32) {
    %c0_i32 = arith.constant 0 : i32
    %c0_i32_0 = arith.constant 0 : i32
    %c0_i32_1 = arith.constant 0 : i32
    return %c0_i32, %c0_i32_0 : i32, i32
  }
  func.func @transform_3(%arg0: i32) -> (i32, i32) {
    %c0_i32 = arith.constant 0 : i32
    %c0_i32_0 = arith.constant 0 : i32
    %c0_i32_1 = arith.constant 0 : i32
    return %c0_i32, %c0_i32_0 : i32, i32
  }
  func.func @transform_4(%arg0: i32) -> (i32, i32) {
    %c0_i32 = arith.constant 0 : i32
    %c0_i32_0 = arith.constant 0 : i32
    %c0_i32_1 = arith.constant 0 : i32
    return %c0_i32, %c0_i32_0 : i32, i32
  }
  func.func @transform_5(%arg0: i32) -> (i32, i32) {
    %c0_i32 = arith.constant 0 : i32
    %c0_i32_0 = arith.constant 0 : i32
    %c0_i32_1 = arith.constant 0 : i32
    return %c0_i32, %c0_i32_0 : i32, i32
  }
  func.func @transform_6(%arg0: i32) -> (i32, i32) {
    %c0_i32 = arith.constant 0 : i32
    %c0_i32_0 = arith.constant 0 : i32
    %c0_i32_1 = arith.constant 0 : i32
    return %c0_i32, %c0_i32_0 : i32, i32
  }
  func.func @transform_7(%arg0: i32) -> (i32, i32) {
    %c0_i32 = arith.constant 0 : i32
    %c0_i32_0 = arith.constant 0 : i32
    %c0_i32_1 = arith.constant 0 : i32
    return %c0_i32, %c0_i32_0 : i32, i32
  }
  func.func @transform_8(%arg0: i32) -> (i32, i32) {
    %c0_i32 = arith.constant 0 : i32
    %c0_i32_0 = arith.constant 0 : i32
    %c0_i32_1 = arith.constant 0 : i32
    return %c0_i32, %c0_i32_0 : i32, i32
  }
  func.func @transform_9(%arg0: i32) -> (i32, i32) {
    %c0_i32 = arith.constant 0 : i32
    %c0_i32_0 = arith.constant 0 : i32
    %c0_i32_1 = arith.constant 0 : i32
    return %c0_i32, %c0_i32_0 : i32, i32
  }
  func.func @transform_10(%arg0: i32) -> (i32, i32) {
    %c0_i32 = arith.constant 0 : i32
    %c0_i32_0 = arith.constant 0 : i32
    return %arg0, %c0_i32 : i32, i32
  }
}

</mosaic_0001>

<bundles_post_ra>
// kernel: decoder_forward.1
= control target key start
LH: loop header
LB: loop body
LE: loop exit
PB: predicated region body
PF: predicated region fallthrough
CT: control target
= control target key end

     0   :  { %v628_v36 = vmov 0.0   ;;  %vm151_vm0 = vcmask 64512   ;;  %vm629_vm1 = vmmov 0   ;;  %vm349_vm2 = vcmask 261120   ;;  %s948_s1 = inlined_call_operand.vmem [shape: f32[256,8], index: 1, kind: input, shape index: {}]   ;;  %s949_s0 = inlined_call_operand.vmem [shape: f32[4,256], index: 0, kind: input, shape index: {}]   ;;  %s950_s3 = inlined_call_operand.vmem [shape: f32[8,256], index: 3, kind: input, shape index: {}]   ;;  %s951_s4 = inlined_call_operand.vmem [shape: f32[256,32], index: 4, kind: input, shape index: {}]   ;;  %s952_s2 = inlined_call_operand.vmem [shape: f32[1,8], index: 2, kind: input, shape index: {}]   ;;  %s953_s6 = inlined_call_operand.vmem [shape: f32[32,32], index: 6, kind: input, shape index: {}]   ;;  %s954_s8 = inlined_call_operand.vmem [shape: f32[32,2], index: 8, kind: input, shape index: {}]   ;;  %s955_s5 = inlined_call_operand.vmem [shape: f32[1,32], index: 5, kind: input, shape index: {}]   ;;  %s956_s7 = inlined_call_operand.vmem [shape: f32[1,32], index: 7, kind: input, shape index: {}]   ;;  %s957_s9 = inlined_call_operand.vmem [shape: f32[1,2], index: 9, kind: input, shape index: {}]   ;;  %s958_s10 = inlined_call_operand.vmem [shape: f32[4,2], index: 10, kind: output, shape index: {}]  }
   0x1   :  { %v67_v0 = vld [vmem:[%s948_s1 + $0xf8] sm:$0xff]  ;;  %v66_v2 = vld [vmem:[%s948_s1 + $0xf0] sm:$0xff]  ;;  %v65_v4 = vld [vmem:[%s948_s1 + $0xe8] sm:$0xff]  ;;  %219 = vmatprep.mubr.f32.mxu1 %v628_v36  ;;  %vm508_vm3 = vcmask 11264  }
   0x2   :  { %v51_v1 = vld [vmem:[%s948_s1 + $0x78] sm:$0xff]  ;;  %521 = vmatprep.subr.mxu0 %v67_v0  ;;  %v50_v3 = vld [vmem:[%s948_s1 + $0x70] sm:$0xff]  ;;  %v49_v5 = vld [vmem:[%s948_s1 + $0x68] sm:$0xff] }
   0x3   :  { %522 = vmatpush3.msra.mxu0 %v51_v1  ;;  %v64_v6 = vld [vmem:[%s948_s1 + $0xe0] sm:$0xff]  ;;  %v63_v8 = vld [vmem:[%s948_s1 + $0xd8] sm:$0xff]  ;;  %v62_v10 = vld [vmem:[%s948_s1 + $0xd0] sm:$0xff] }
   0x4   :  { %523 = vmatprep.subr.mxu0 %v66_v2  ;;  %v48_v7 = vld [vmem:[%s948_s1 + $0x60] sm:$0xff]  ;;  %v47_v9 = vld [vmem:[%s948_s1 + $0x58] sm:$0xff]  ;;  %v46_v11 = vld [vmem:[%s948_s1 + $0x50] sm:$0xff] }
   0x5   :  { %524 = vmatpush3.msra.mxu0 %v50_v3  ;;  %v61_v12 = vld [vmem:[%s948_s1 + $0xc8] sm:$0xff]  ;;  %v727_v13 = vld [vmem:[%s949_s0] sm:$0xff]  ;;  %v59_v18 = vld [vmem:[%s948_s1 + $0xb8] sm:$0xff] }
   0x6   :  { %525 = vmatprep.subr.mxu0 %v65_v4  ;;  %v45_v14 = vld [vmem:[%s948_s1 + $0x48] sm:$0xff]  ;;  %v734_v15 = vcombine.high %v727_v13, %v727_v13  ;;  %v60_v16 = vld [vmem:[%s948_s1 + $0xc0] sm:$0xff]  ;;  %v43_v19 = vld [vmem:[%s948_s1 + $0x38] sm:$0xff] }
   0x7   :  { %526 = vmatpush3.msra.mxu0 %v49_v5  ;;  %v44_v17 = vld [vmem:[%s948_s1 + $0x40] sm:$0xff]  ;;  %v58_v20 = vld [vmem:[%s948_s1 + $0xb0] sm:$0xff]  ;;  %v57_v22 = vld [vmem:[%s948_s1 + $0xa8] sm:$0xff] }
   0x8   :  { %527 = vmatprep.subr.mxu0 %v64_v6  ;;  %142 = vmatprep.mubr.f32.mxu0 %v734_v15  ;;  %v42_v21 = vld [vmem:[%s948_s1 + $0x30] sm:$0xff]  ;;  %v41_v23 = vld [vmem:[%s948_s1 + $0x28] sm:$0xff]  ;;  %v56_v24 = vld [vmem:[%s948_s1 + $0xa0] sm:$0xff] }
   0x9   :  { %528 = vmatpush3.msra.mxu0 %v48_v7  ;;  %v40_v25 = vld [vmem:[%s948_s1 + $0x20] sm:$0xff]  ;;  %v55_v26 = vld [vmem:[%s948_s1 + $0x98] sm:$0xff]  ;;  %v54_v28 = vld [vmem:[%s948_s1 + $0x90] sm:$0xff] }
   0xa   :  { %529 = vmatprep.subr.mxu0 %v63_v8  ;;  %v39_v27 = vld [vmem:[%s948_s1 + $0x18] sm:$0xff]  ;;  %v38_v29 = vld [vmem:[%s948_s1 + $0x10] sm:$0xff]  ;;  %v53_v30 = vld [vmem:[%s948_s1 + $0x88] sm:$0xff] }
   0xb   :  { %530 = vmatpush3.msra.mxu0 %v47_v9  ;;  %v37_v31 = vld [vmem:[%s948_s1 + $0x8] sm:$0xff]  ;;  %v52_v32 = vld [vmem:[%s948_s1 + $0x80] sm:$0xff]  ;;  %v259_v37 = vld [vmem:[%s951_s4 + $0xf8] sm:$0xff] }
   0xc   :  { %531 = vmatprep.subr.mxu0 %v62_v10  ;;  %v36_v33 = vld [vmem:[%s948_s1] sm:$0xff]  ;;  %v150_v34 = vld [vmem:[%s950_s3 + $0x8] sm:$0xff]  ;;  %v243_v43 = vld [vmem:[%s951_s4 + $0x78] sm:$0xff] }
   0xd   :  { %532 = vmatpush3.msra.mxu0 %v46_v11  ;;  %v149_v35 = vld [vmem:[%s950_s3] sm:$0xff]  ;;  %185 = vmatprep.subr.mxu1 %v150_v34  ;;  %v258_v45 = vld [vmem:[%s951_s4 + $0xf0] sm:$0xff]  ;;  %v257_v47 = vld [vmem:[%s951_s4 + $0xe8] sm:$0xff] }
   0xe   :  { %533 = vmatprep.subr.mxu0 %v61_v12  ;;  %186 = vmatpush1.msra.mxu1 %v149_v35  ;;  %v514_v39 = vld [vmem:[%s952_s2] ss:$0 sm:$0xff]  ;;  %v242_v46 = vld [vmem:[%s951_s4 + $0x70] sm:$0xff]  ;;  %v241_v48 = vld [vmem:[%s951_s4 + $0x68] sm:$0xff] }
   0xf   :  { %534 = vmatpush3.msra.mxu0 %v45_v14  ;;  %556 = vmatprep.subr.mxu1 %v259_v37  ;;  %v256_v49 = vld [vmem:[%s951_s4 + $0xe0] sm:$0xff]  ;;  %v255_v51 = vld [vmem:[%s951_s4 + $0xd8] sm:$0xff]  ;;  %v254_v53 = vld [vmem:[%s951_s4 + $0xd0] sm:$0xff] }
  0x10   :  { %535 = vmatprep.subr.mxu0 %v60_v16  ;;  %v240_v50 = vld [vmem:[%s951_s4 + $0x60] sm:$0xff]  ;;  %v239_v52 = vld [vmem:[%s951_s4 + $0x58] sm:$0xff]  ;;  %v238_v54 = vld [vmem:[%s951_s4 + $0x50] sm:$0xff] }
  0x11   :  { %536 = vmatpush3.msra.mxu0 %v44_v17  ;;  %v253_v55 = vld [vmem:[%s951_s4 + $0xc8] sm:$0xff]  ;;  %v252_v57 = vld [vmem:[%s951_s4 + $0xc0] sm:$0xff]  ;;  %v251_v59 = vld [vmem:[%s951_s4 + $0xb8] sm:$0xff] }
  0x12   :  { %537 = vmatprep.subr.mxu0 %v59_v18  ;;  %v237_v56 = vld [vmem:[%s951_s4 + $0x48] sm:$0xff]  ;;  %v236_v58 = vld [vmem:[%s951_s4 + $0x40] sm:$0xff]  ;;  %v235_v60 = vld [vmem:[%s951_s4 + $0x38] sm:$0xff] }
  0x13   :  { %538 = vmatpush3.msra.mxu0 %v43_v19  ;;  %v250_v61 = vld [vmem:[%s951_s4 + $0xb0] sm:$0xff]  ;;  %v249_v63 = vld [vmem:[%s951_s4 + $0xa8] sm:$0xff]  ;;  %v248_v1 = vld [vmem:[%s951_s4 + $0xa0] sm:$0xff] }
  0x14   :  { %539 = vmatprep.subr.mxu0 %v58_v20  ;;  %v234_v62 = vld [vmem:[%s951_s4 + $0x30] sm:$0xff]  ;;  %v233_v0 = vld [vmem:[%s951_s4 + $0x28] sm:$0xff]  ;;  %v232_v2 = vld [vmem:[%s951_s4 + $0x20] sm:$0xff] }
  0x15   :  { %540 = vmatpush3.msra.mxu0 %v42_v21  ;;  %v247_v3 = vld [vmem:[%s951_s4 + $0x98] sm:$0xff]  ;;  %v246_v5 = vld [vmem:[%s951_s4 + $0x90] sm:$0xff]  ;;  %v245_v7 = vld [vmem:[%s951_s4 + $0x88] sm:$0xff] }
  0x16   :  { %541 = vmatprep.subr.mxu0 %v57_v22  ;;  %v231_v4 = vld [vmem:[%s951_s4 + $0x18] sm:$0xff]  ;;  %v230_v6 = vld [vmem:[%s951_s4 + $0x10] sm:$0xff]  ;;  %v229_v8 = vld [vmem:[%s951_s4 + $0x8] sm:$0xff] }
  0x17   :  { %542 = vmatpush3.msra.mxu0 %v41_v23  ;;  %v244_v9 = vld [vmem:[%s951_s4 + $0x80] sm:$0xff]  ;;  %v341_v17 = vld [vmem:[%s953_s6 + $0x18] sm:$0xff]  ;;  %v340_v18 = vld [vmem:[%s953_s6 + $0x10] sm:$0xff] }
  0x18   :  { %543 = vmatprep.subr.mxu0 %v56_v24  ;;  %v228_v10 = vld [vmem:[%s951_s4] sm:$0xff]  ;;  %v427_v19 = vld [vmem:[%s954_s8 + $0x18] sm:$0xff] }
  0x19   :  { %544 = vmatpush3.msra.mxu0 %v40_v25  ;;  %v516_v21 = vld [vmem:[%s955_s5] ss:$0 sm:$0xff] }
  0x1a   :  { %545 = vmatprep.subr.mxu0 %v55_v26  ;;  %v426_v26 = vld [vmem:[%s954_s8 + $0x10] sm:$0xff]  ;;  %v519_v34 = vld [vmem:[%s957_s9] ss:$0 sm:$0xff] }
  0x1b   :  { %546 = vmatpush3.msra.mxu0 %v39_v27  ;;  %v425_v27 = vld [vmem:[%s954_s8 + $0x8] sm:$0xff] }
  0x1c   :  { %547 = vmatprep.subr.mxu0 %v54_v28  ;;  %v424_v28 = vld [vmem:[%s954_s8] sm:$0xff] }
  0x1d   :  { %548 = vmatpush3.msra.mxu0 %v38_v29  ;;  %v517_v29 = vld [vmem:[%s956_s7] ss:$0 sm:$0xff] }
  0x1e   :  { %549 = vmatprep.subr.mxu0 %v53_v30 }
  0x1f   :  { %550 = vmatpush3.msra.mxu0 %v37_v31 }
  0x20   :  { %551 = vmatprep.subr.mxu0 %v52_v32 }
  0x21   :  { %552 = vmatpush3.msra.mxu0 %v36_v33 }
  0x22   :  { %143 = vmatmul.mubr.f32.vlgmr.msra.gmra.mxu0 %v727_v13  ;;  %601 = vmatprep.subr.mxu0 %v628_v36 }
  0x23   :  { %602 = vmatpush3.msra.mxu0 %v341_v17  ;;  %609 = vmatprep.mubr.msk.f32.mxu0 %vm629_vm1, %v628_v36 }
  0x24   :  { %603 = vmatprep.subr.mxu0 %v628_v36 }
  0x25   :  { %604 = vmatpush3.msra.mxu0 %v340_v18 }
  0x26   :  { %605 = vmatprep.subr.mxu0 %v628_v36 }
  0xe2   :  { %v553_v38 = vpop.f32.mrf.mxu0 }
  0xe4   :  { %v554_v40 = vpop.f32.mrf.mxu0 }
  0xe5   :  { %v555_v41 = vadd.f32 %v554_v40, %v553_v38 }
  0xe7   :  { %v145_v42 = vadd.f32 %v555_v41, %v514_v39 }
  0xe9   :  { %626 = vtanh.f32 %v145_v42 }
  0xf6   :  { %v627_v44 = vpop.eup %626 }
  0xf7   :  { %515 = vmatmul.mubr.msk.f32.vlgmr.msra.gmra.mxu1 %vm151_vm0, %v627_v44 }
  0xf8   :  { %557 = vmatpush3.msra.mxu1 %v243_v43 }
  0xf9   :  { %558 = vmatprep.subr.mxu1 %v258_v45 }
  0xfa   :  { %559 = vmatpush3.msra.mxu1 %v242_v46 }
  0xfb   :  { %560 = vmatprep.subr.mxu1 %v257_v47 }
  0xfc   :  { %561 = vmatpush3.msra.mxu1 %v241_v48 }
  0xfd   :  { %562 = vmatprep.subr.mxu1 %v256_v49 }
  0xfe   :  { %563 = vmatpush3.msra.mxu1 %v240_v50 }
  0xff   :  { %564 = vmatprep.subr.mxu1 %v255_v51 }
 0x100   :  { %565 = vmatpush3.msra.mxu1 %v239_v52 }
 0x101   :  { %566 = vmatprep.subr.mxu1 %v254_v53 }
 0x102   :  { %567 = vmatpush3.msra.mxu1 %v238_v54 }
 0x103   :  { %568 = vmatprep.subr.mxu1 %v253_v55 }
 0x104   :  { %569 = vmatpush3.msra.mxu1 %v237_v56 }
 0x105   :  { %570 = vmatprep.subr.mxu1 %v252_v57 }
 0x106   :  { %571 = vmatpush3.msra.mxu1 %v236_v58 }
 0x107   :  { %572 = vmatprep.subr.mxu1 %v251_v59 }
 0x108   :  { %573 = vmatpush3.msra.mxu1 %v235_v60 }
 0x109   :  { %574 = vmatprep.subr.mxu1 %v250_v61 }
 0x10a   :  { %575 = vmatpush3.msra.mxu1 %v234_v62 }
 0x10b   :  { %576 = vmatprep.subr.mxu1 %v249_v63 }
 0x10c   :  { %577 = vmatpush3.msra.mxu1 %v233_v0 }
 0x10d   :  { %578 = vmatprep.subr.mxu1 %v248_v1 }
 0x10e   :  { %579 = vmatpush3.msra.mxu1 %v232_v2 }
 0x10f   :  { %580 = vmatprep.subr.mxu1 %v247_v3 }
 0x110   :  { %581 = vmatpush3.msra.mxu1 %v231_v4 }
 0x111   :  { %582 = vmatprep.subr.mxu1 %v246_v5 }
 0x112   :  { %583 = vmatpush3.msra.mxu1 %v230_v6 }
 0x113   :  { %584 = vmatprep.subr.mxu1 %v245_v7 }
 0x114   :  { %585 = vmatpush3.msra.mxu1 %v229_v8 }
 0x115   :  { %586 = vmatprep.subr.mxu1 %v244_v9 }
 0x116   :  { %587 = vmatpush3.msra.mxu1 %v228_v10 }
 0x117   :  { %612 = vmatprep.subr.mxu1 %v628_v36 }
 0x1b7   :  { %v221_v11 = vpop.f32.mrf.mxu1 }
 0x1b8   :  { %v226_v16 = vmul.f32 %v221_v11, %v727_v13  ;;  %v339_v13 = vld [vmem:[%s953_s6 + $0x8] sm:$0xff] }
 0x1b9   :  { %v223_v12 = vpop.f32.mrf.mxu1  ;;  %606 = vmatpush3.msra.mxu0 %v339_v13 }
 0x1ba   :  { %v227_v14 = vmul.f32 %v223_v12, %v734_v15  ;;  %607 = vmatprep.subr.mxu0 %v628_v36  ;;  %v338_v15 = vld [vmem:[%s953_s6] sm:$0xff] }
 0x1bb   :  { %608 = vmatpush3.msra.mxu0 %v338_v15 }
 0x1bc   :  { %331 = vmatprep.mubr.f32.mxu1 %v227_v14 }
 0x1bd   :  { %332 = vmatmul.mubr.f32.vlgmr.msra.gmra.mxu1 %v226_v16 }
 0x1be   :  { %620 = vmatprep.mubr.msk.f32.mxu1 %vm629_vm1, %v628_v36  ;;  %613 = vmatpush3.msra.mxu1 %v427_v19 }
 0x1bf   :  { %614 = vmatprep.subr.mxu1 %v628_v36 }
 0x1c0   :  { %615 = vmatpush3.msra.mxu1 %v426_v26 }
 0x1c1   :  { %616 = vmatprep.subr.mxu1 %v628_v36 }
 0x1c2   :  { %617 = vmatpush3.msra.mxu1 %v425_v27 }
 0x1c3   :  { %618 = vmatprep.subr.mxu1 %v628_v36 }
 0x1c4   :  { %619 = vmatpush3.msra.mxu1 %v424_v28 }
 0x27d   :  { %v588_v20 = vpop.f32.mrf.mxu1 }
 0x27f   :  { %v589_v22 = vpop.f32.mrf.mxu1 }
 0x280   :  { %v590_v23 = vadd.f32 %v589_v22, %v588_v20 }
 0x282   :  { %v334_v24 = vadd.f32 %v590_v23, %v516_v21 }
 0x284   :  { %v337_v25 = vmax.f32 %v334_v24, 0.0 }
 0x286   :  { %610 = vmatmul.mubr.msk.f32.vlgmr.msra.gmra.mxu0 %vm349_vm2, %v337_v25 }
 0x346   :  { %v419_v30 = vpop.f32.mrf.mxu0 }
 0x347   :  { %v420_v31 = vadd.f32 %v517_v29, %v419_v30 }
 0x348   :  { %v611_v32 = vpop.f32.mrf.mxu0 }
 0x349   :  { %v423_v33 = vmax.f32 %v420_v31, 0.0 }
 0x34b   :  { %621 = vmatmul.mubr.msk.f32.vlgmr.msra.gmra.mxu1 %vm349_vm2, %v423_v33 }
 0x40b   :  { %v504_v35 = vpop.f32.mrf.mxu1 }
 0x40c   :  { %v505_v36 = vadd.f32 %v519_v34, %v504_v35 }
 0x40d   :  { %v622_v37 = vpop.f32.mrf.mxu1 }
 0x40e   :  { %509 = vst.msk [vmem:[%s958_s10] sm:$0xf] %vm508_vm3, %v505_v36 }

</bundles_post_ra>
